<compile_context>
chip_gen: v7x
topology: tpu7x:2x2x1
jax: 0.10.0
libtpu: 0.0.40
codegen_flags: <defaults>
</compile_context>

<pallas_src>
import functools
import math

import numpy as np
import jax
import jax.numpy as jnp
from jax.experimental import pallas as pl
from jax.experimental.pallas import tpu as pltpu


# ---------------------------------------------------------------------------
# Buffer setup (glue, mirrors the PyTorch __init__ exactly)
# ---------------------------------------------------------------------------
def build_pe(max_len: int, d_model: int, dtype=jnp.float32) -> jnp.ndarray:
    position = np.arange(0, max_len, dtype=np.float32)[:, None]            # (max_len, 1)
    div_term = np.exp(
        np.arange(0, d_model, 2, dtype=np.float32)
        * (-math.log(10000.0) / (d_model * 0.5))
    )                                                                       # (d_model/2,)
    pe = np.zeros((max_len, d_model), dtype=np.float32)
    pe[:, 0::2] = np.sin(position * div_term)
    pe[:, 1::2] = np.cos(position * div_term)
    # unsqueeze(0).transpose(0, 1) -> (max_len, 1, d_model)
    return jnp.asarray(pe[:, None, :], dtype=dtype)


# ---------------------------------------------------------------------------
# Kernels (operate on the flattened (S, B*D) slab)
# ---------------------------------------------------------------------------
def _replicate_pe(pe, batch):
    # (ts, D) -> (ts, B*D): replicate along lanes to match the flattened x row.
    if batch == 1:
        return pe
    return jnp.concatenate([pe] * batch, axis=-1)


def _pe_add_kernel(x_ref, pe_ref, o_ref, *, batch):
    pe = _replicate_pe(pe_ref[...], batch)
    o_ref[...] = (x_ref[...] + pe.astype(x_ref.dtype)).astype(o_ref.dtype)


def _pe_add_dropout_kernel(x_ref, pe_ref, bits_ref, o_ref, *, batch,
                           drop_threshold, scale):
    pe = _replicate_pe(pe_ref[...], batch)
    y = x_ref[...] + pe.astype(x_ref.dtype)
    # Integer threshold compare: P(bits >= p*2^32) = 1 - p  (keep probability).
    keep = bits_ref[...] >= jnp.uint32(drop_threshold)
    o_ref[...] = jnp.where(keep, y * scale, jnp.zeros_like(y)).astype(o_ref.dtype)


# ---------------------------------------------------------------------------
# Tile selection: ~target_bytes of x per block, sublane-aligned, clamped to S.
# ---------------------------------------------------------------------------
def _pick_tile_rows(S, row_bytes, target_bytes=2 << 20):
    rows = max(1, target_bytes // max(row_bytes, 1))
    if rows >= S or S <= 8:
        return S                       # single / full-extent block
    return max(8, (rows // 8) * 8)     # multiple of 8 -> dense sublanes


# ---------------------------------------------------------------------------
# Wrapper
# ---------------------------------------------------------------------------
def positional_encoding_forward(x, pe, *, p=0.1, training=False, rng_key=None,
                                target_block_bytes=2 << 20):
    """x: (S, B, D), pe: (max_len, 1, D). Returns dropout(x + pe[:S])."""
    S, B, D = x.shape
    assert pe.shape[-1] == D
    dtype = x.dtype

    # Free row-major reshapes: lane-dense 2-D slabs for the kernel.
    x2 = x.reshape(S, B * D)
    pe2 = pe.reshape(pe.shape[0], D).astype(dtype)     # (max_len, D)

    row_bytes = B * D * np.dtype(dtype).itemsize
    ts = _pick_tile_rows(S, row_bytes, target_block_bytes)
    grid = (pl.cdiv(S, ts),)

    # pe: window the full buffer via the BlockSpec when ts is sublane-aligned;
    # otherwise (ts == S, S % 8 != 0) take a tiny static slice so the block
    # equals the full array dims.
    if ts % 8 == 0 or ts == pe2.shape[0]:
        pe_in = pe2
    else:
        pe_in = pe2[:S]

    x_spec = pl.BlockSpec((ts, B * D), lambda i: (i, 0))
    pe_spec = pl.BlockSpec((ts, D), lambda i: (i, 0))
    out_spec = pl.BlockSpec((ts, B * D), lambda i: (i, 0))
    out_shape = jax.ShapeDtypeStruct((S, B * D), dtype)

    cparams = pltpu.CompilerParams(
        dimension_semantics=("parallel",),          # grid steps independent (2 TCs on v7x)
        vmem_limit_bytes=32 * 1024 * 1024,          # headroom for double-buffered tiles
    )

    if (not training) or p <= 0.0:
        kernel = functools.partial(_pe_add_kernel, batch=B)
        y2 = pl.pallas_call(
            kernel,
            out_shape=out_shape,
            grid=grid,
            in_specs=[x_spec, pe_spec],
            out_specs=out_spec,
            compiler_params=cparams,
        )(x2, pe_in)
    else:
        if rng_key is None:
            rng_key = jax.random.PRNGKey(0)
        # TODO(synk): torch.nn.Dropout uses torch's RNG stream; here the mask
        # bits come from jax.random (same distribution, not bit-identical).
        bits = jax.random.bits(rng_key, (S, B * D), dtype=jnp.uint32)
        drop_threshold = min(int(round(p * 2.0 ** 32)), 2 ** 32 - 1)
        kernel = functools.partial(
            _pe_add_dropout_kernel,
            batch=B,
            drop_threshold=drop_threshold,
            scale=float(1.0 / (1.0 - p)),
        )
        bits_spec = pl.BlockSpec((ts, B * D), lambda i: (i, 0))
        y2 = pl.pallas_call(
            kernel,
            out_shape=out_shape,
            grid=grid,
            in_specs=[x_spec, pe_spec, bits_spec],
            out_specs=out_spec,
            compiler_params=cparams,
        )(x2, pe_in, bits)

    return y2.reshape(S, B, D)


# ---------------------------------------------------------------------------
# Main
# ---------------------------------------------------------------------------
if __name__ == "__main__":
    S, B, D = 8, 2, 32
    MAX_LEN = 5000

    key = jax.random.PRNGKey(0)
    kx, kd = jax.random.split(key)
    x = jax.random.normal(kx, (S, B, D), dtype=jnp.float32)
    pe = build_pe(MAX_LEN, D)

    # Eval mode: dropout is identity -> exact check against pure-JAX reference.
    y_eval = positional_encoding_forward(x, pe, training=False)
    jax.block_until_ready(y_eval)
    ref = x + pe[:S]
    np.testing.assert_allclose(np.asarray(y_eval), np.asarray(ref),
                               rtol=1e-6, atol=1e-6)

    # Training mode: dropout(p=0.1) applied in-kernel via integer-threshold mask.
    p = 0.1
    y_train = positional_encoding_forward(x, pe, p=p, training=True, rng_key=kd)
    jax.block_until_ready(y_train)
    assert y_train.shape == (S, B, D)
    yt = np.asarray(y_train)
    rf = np.asarray(ref)
    kept = yt != 0.0
    # Every surviving element must equal (x + pe) / (1 - p).
    np.testing.assert_allclose(yt[kept], (rf / (1.0 - p))[kept],
                               rtol=1e-5, atol=1e-5)

    print("KERNEL_OK")
</pallas_src>

<mosaic_0001>
module attributes {stable_mosaic.version = 11 : i64} {
  func.func @_pe_add_kernel(%arg0: i32, %arg1: memref<8x64xf32, #tpu.memory_space<vmem>>, %arg2: memref<8x32xf32, #tpu.memory_space<vmem>>, %arg3: memref<8x64xf32, #tpu.memory_space<vmem>>) attributes {dimension_semantics = [#tpu.dimension_semantics<parallel>], iteration_bounds = array<i64: 1>, scalar_prefetch = 0 : i64, scratch_operands = 0 : i64, tpu.core_type = #tpu.core_type<tc>, window_params = [{transform_indices = @transform_0, window_bounds = array<i64: 8, 64>}, {transform_indices = @transform_1, window_bounds = array<i64: 8, 32>}, {transform_indices = @transform_2, window_bounds = array<i64: 8, 64>}]} {
    %c0 = arith.constant 0 : index
    %c0_0 = arith.constant 0 : index
    %0 = vector.load %arg2[%c0, %c0_0] : memref<8x32xf32, #tpu.memory_space<vmem>>, vector<8x32xf32>
    %1 = tpu.concatenate %0, %0 in 1 : vector<8x32xf32>, vector<8x32xf32> -> vector<8x64xf32>
    %c0_1 = arith.constant 0 : index
    %c0_2 = arith.constant 0 : index
    %2 = vector.load %arg1[%c0_1, %c0_2] : memref<8x64xf32, #tpu.memory_space<vmem>>, vector<8x64xf32>
    %3 = arith.addf %2, %1 : vector<8x64xf32>
    %c0_3 = arith.constant 0 : index
    %c0_4 = arith.constant 0 : index
    %4 = vector.load %arg3[%c0_3, %c0_4] : memref<8x64xf32, #tpu.memory_space<vmem>>, vector<8x64xf32>
    tpu.vector_store %arg3[%c0_3, %c0_4], %3 {strides = array<i32>} : memref<8x64xf32, #tpu.memory_space<vmem>>, vector<8x64xf32>,
    return
  }
  func.func @transform_0(%arg0: i32) -> (i32, i32) {
    %c0_i32 = arith.constant 0 : i32
    %c0_i32_0 = arith.constant 0 : i32
    return %arg0, %c0_i32 : i32, i32
  }
  func.func @transform_1(%arg0: i32) -> (i32, i32) {
    %c0_i32 = arith.constant 0 : i32
    %c0_i32_0 = arith.constant 0 : i32
    return %arg0, %c0_i32 : i32, i32
  }
  func.func @transform_2(%arg0: i32) -> (i32, i32) {
    %c0_i32 = arith.constant 0 : i32
    %c0_i32_0 = arith.constant 0 : i32
    return %arg0, %c0_i32 : i32, i32
  }
}

</mosaic_0001>

<bundles_post_ra>
// kernel: tpu_custom_call.1
= control target key start
LH: loop header
LB: loop body
LE: loop exit
PB: predicated region body
PF: predicated region fallthrough
CT: control target
= control target key end

     0   :  { %s98_s0 = inlined_call_operand.vmem [shape: f32[8,64], index: 0, kind: input, shape index: {}]   ;;  %s99_s1 = inlined_call_operand.vmem [shape: f32[5000,32], index: 1, kind: input, shape index: {}]   ;;  %s100_s2 = inlined_call_operand.hbm [shape: f32[8,64], index: 2, kind: output, shape index: {}]  }
   0x1   :  { %v12_v0 = vld [vmem:[%s99_s1] sm:$0xff] }
   0x2   :  { %7 = vsyncpa [#allocation3], 0  ;;  %s63_s11 = smov 32   ;;  %vm17_vm0 = vcmask 261120   ;;  %v19_v1 = vld [vmem:[%s98_s0] sm:$0xff]  ;;  %s64_s14 = smov [#allocation2]  }
   0x3   :  { %14 = vrot.lane.b32.xlu0 %v12_v0, %s63_s11  ;;  %s29_s15 = sshll.u32 %s64_s14, 4  ;;  %vm21_vm1 = vcmask 523264   ;;  %s30_s15 = int_to_ptr.vmem [resolvable:$true] %s29_s15 }
   0x4   :  { %s39_s16 = scalar_lea.vmem %s30_s15, 128  ;;  %p44_p1 = scmp.lt.s32.totalorder %s30_s15, %s30_s15 }
   0x5   :  { %p40_p0 = scmp.ne.s32.totalorder %s30_s15, %s39_s16  ;;  %p45_p2 = scmp.lt.s32.totalorder %s39_s16, %s39_s16 }
   0x7   :  { %p46_p3 = por %p45_p2, %p44_p1 }
   0x9   :  { %p47_p4 = pnand %p46_p3, %p40_p0 }
  0x75   :  { %v15_v2 = vpop.permute.xlu0 %14 }
  0x76   :  { %v18_v3 = vsel %vm17_vm0, %v12_v0, %v15_v2 }
  0x77   :  { %v20_v4 = vadd.f32 %v19_v1, %v18_v3 }
  0x79   :  { %22 = vst.msk [vmem:[#allocation2] sm:$0xff] %vm21_vm1, %v20_v4 }
  0x7a   :  { %50 = shalt.err (!%p47_p4)
}
  0x7b   :  { %s51_s18 = scalar_lea.hbm %s100_s2, 128 }
  0x7c   :  { %p52_p5 = scmp.ne.s32.totalorder %s100_s2, %s51_s18  ;;  %p55_p6 = scmp.lt.u32.totalorder %s51_s18, %s100_s2 }
  0x7e   :  { %p57_p7 = pnand %p55_p6, %p52_p5 }
  0x80   :  { %60 = shalt.err (!%p57_p7)
}
  0x81   :  { %32 = dma.vmem_to_hbm [thread:$0]  %s30_s15, 128, %s100_s2, [#allocation3]  }
  0x82   :  { %61 = dma.done.wait [#allocation3], 128  }
  0x83   :  { %62 = vsyncadd [#allocation3], 4294967168 }
  0x84   :  { %36 = vsyncpa [#allocation3], 1 }

</bundles_post_ra>
